<compile_context>
chip_gen: v5e
topology: v5e:2x2
jax: 0.10.0
libtpu: 0.0.40
codegen_flags: <defaults>
</compile_context>

<pallas_src>
import jax
import jax.numpy as jnp
from jax.experimental import pallas as pl
from jax.experimental.pallas import tpu as pltpu


IN_F = 100   # logical input features (streamed unpadded)
HID = 80     # logical hidden features
PAD = 128    # lane-aligned padded hidden width (weights only)


def _round_up(n, m):
    return ((n + m - 1) // m) * m


def mlp_kernel(x_ref, w1_ref, b1_ref, w2_ref, o_ref):
    # On-tile bf16 cast of the streamed f32 rows (MXU-native operands).
    x_bf = x_ref[...].astype(jnp.bfloat16)                       # (TB, 100)
    # Layer 1 on the MXU, f32 accumulation.
    z = jnp.dot(x_bf, w1_ref[...], preferred_element_type=jnp.float32)
    z = z + b1_ref[...]                                           # (TB, 128) f32
    # sigmoid(z) = 0.5 * (tanh(z/2) + 1): one EUP op per dense vreg.
    h = 0.5 * (jnp.tanh(0.5 * z) + 1.0)
    # Layer 2 (N=1): VPU multiply + XLU lane reduction instead of an MXU pass.
    # Padded lanes: h=0.5 * w2=0 -> contribute nothing.
    o_ref[...] = jnp.sum(h * w2_ref[...], axis=-1, keepdims=True)  # (TB, 1) f32


def ann_forward(x, w1, b1, w2, b2, *, block_rows=None):
    """sigmoid(sigmoid(x @ w1 + b1) @ w2 + b2); x: (B, 100) f32 -> (B, 1) f32."""
    B = x.shape[0]
    if block_rows is None:
        # Big enough to amortize the ~0.35 us per-step overhead, small enough
        # to stay inside default scoped VMEM everywhere, and sized so large B
        # keeps >= 8 grid steps (v7x: 2 TCs need several steps each).
        block_rows = max(8, min(4096, _round_up(pl.cdiv(B, 8), 8)))
    # Guard: (8,128) tiling rule requires the row-block to be a multiple of 8.
    TB = _round_up(block_rows, 8)
    n_blocks = pl.cdiv(B, TB)

    # --- host-side: pad only the tiny weights to 128 lanes, cast W1 to bf16 ---
    w1_p = jnp.zeros((IN_F, PAD), jnp.bfloat16)
    w1_p = w1_p.at[:, :HID].set(w1.astype(jnp.bfloat16))
    b1_p = jnp.zeros((1, PAD), jnp.float32).at[:, :HID].set(
        b1.astype(jnp.float32).reshape(1, HID))
    w2_p = jnp.zeros((1, PAD), jnp.float32).at[:, :HID].set(
        w2.astype(jnp.float32).reshape(1, HID))

    cost = pl.CostEstimate(
        flops=2 * B * IN_F * PAD,
        transcendentals=B * PAD,
        bytes_accessed=B * (IN_F * 4 + 4) + IN_F * PAD * 2 + 2 * PAD * 4,
    )

    pre = pl.pallas_call(
        mlp_kernel,
        out_shape=jax.ShapeDtypeStruct((B, 1), jnp.float32),
        grid=(n_blocks,),
        in_specs=[
            pl.BlockSpec((TB, IN_F), lambda i: (i, 0)),   # raw x rows (streamed)
            pl.BlockSpec((IN_F, PAD), lambda i: (0, 0)),  # w1 (resident)
            pl.BlockSpec((1, PAD), lambda i: (0, 0)),     # b1 (resident)
            pl.BlockSpec((1, PAD), lambda i: (0, 0)),     # w2 row (resident)
        ],
        out_specs=pl.BlockSpec((TB, 1), lambda i: (i, 0)),
        compiler_params=pltpu.CompilerParams(
            dimension_semantics=("parallel",),   # v7x: shard batch over 2 TCs
        ),
        cost_estimate=cost,
    )(x.astype(jnp.float32), w1_p, b1_p, w2_p)

    # Second-layer bias + sigmoid fused wrapper-side (trivial 8 B/row XLA op).
    return jax.nn.sigmoid(pre + b2.astype(jnp.float32).reshape(1, 1))


def init_params(key):
    """Deterministic init matching PyTorch nn.Linear default U(-1/sqrt(fan_in), +)."""
    k1, k2, k3, k4 = jax.random.split(key, 4)
    bound1 = 1.0 / jnp.sqrt(100.0)
    bound2 = 1.0 / jnp.sqrt(80.0)
    # Stored as (in, out) so the kernel computes x @ W.
    w1 = jax.random.uniform(k1, (100, 80), jnp.float32, -bound1, bound1)
    b1 = jax.random.uniform(k2, (1, 80), jnp.float32, -bound1, bound1)
    w2 = jax.random.uniform(k3, (80, 1), jnp.float32, -bound2, bound2)
    b2 = jax.random.uniform(k4, (1, 1), jnp.float32, -bound2, bound2)
    return w1, b1, w2, b2


if __name__ == "__main__":
    key = jax.random.PRNGKey(0)
    kx, kp = jax.random.split(key)

    batch = 8
    x = jax.random.normal(kx, (batch, IN_F), jnp.float32)
    w1, b1, w2, b2 = init_params(kp)

    ann_fwd = jax.jit(ann_forward)
    out = ann_fwd(x, w1, b1, w2, b2)
    jax.block_until_ready(out)

    # Reference 1: matches the kernel's precision recipe (bf16 operands for
    # layer 1, f32 accumulation, f32 elementwise, VPU-style layer-2 reduce).
    xb = x.astype(jnp.bfloat16)
    w1b = w1.astype(jnp.bfloat16)
    h_ref = jax.nn.sigmoid(
        jnp.dot(xb, w1b, preferred_element_type=jnp.float32) + b1)
    ref_matched = jax.nn.sigmoid(
        jnp.sum(h_ref * w2.reshape(1, HID), axis=-1, keepdims=True) + b2)

    # Reference 2: pure f32 forward (looser tolerance covers bf16 operand cast).
    ref_f32 = jax.nn.sigmoid(jax.nn.sigmoid(x @ w1 + b1) @ w2 + b2)

    assert out.shape == (batch, 1)
    assert jnp.allclose(out, ref_matched, atol=1e-4, rtol=1e-4)
    assert jnp.allclose(out, ref_f32, atol=2e-2, rtol=0.0)

    print("KERNEL_OK")
</pallas_src>

<mosaic_0001>
module attributes {stable_mosaic.version = 11 : i64} {
  func.func @mlp_kernel(%arg0: i32, %arg1: memref<8x100xf32, #tpu.memory_space<vmem>>, %arg2: memref<100x128xbf16, #tpu.memory_space<vmem>>, %arg3: memref<1x128xf32, #tpu.memory_space<vmem>>, %arg4: memref<1x128xf32, #tpu.memory_space<vmem>>, %arg5: memref<8x1xf32, #tpu.memory_space<vmem>>) attributes {dimension_semantics = [#tpu.dimension_semantics<parallel>], iteration_bounds = array<i64: 1>, scalar_prefetch = 0 : i64, scratch_operands = 0 : i64, tpu.core_type = #tpu.core_type<tc>, window_params = [{transform_indices = @transform_0, window_bounds = array<i64: 8, 100>}, {pipeline_mode = #tpu.pipeline_mode<synchronous>, transform_indices = @transform_1, window_bounds = array<i64: 100, 128>}, {pipeline_mode = #tpu.pipeline_mode<synchronous>, transform_indices = @transform_2, window_bounds = array<i64: 1, 128>}, {pipeline_mode = #tpu.pipeline_mode<synchronous>, transform_indices = @transform_3, window_bounds = array<i64: 1, 128>}, {transform_indices = @transform_4, window_bounds = array<i64: 8, 1>}]} {
    %c0 = arith.constant 0 : index
    %c0_0 = arith.constant 0 : index
    %0 = vector.load %arg1[%c0, %c0_0] : memref<8x100xf32, #tpu.memory_space<vmem>>, vector<8x100xf32>
    %1 = arith.truncf %0 : vector<8x100xf32> to vector<8x100xbf16>
    %c0_1 = arith.constant 0 : index
    %c0_2 = arith.constant 0 : index
    %2 = vector.load %arg2[%c0_1, %c0_2] : memref<100x128xbf16, #tpu.memory_space<vmem>>, vector<100x128xbf16>
    %cst = arith.constant dense<0.000000e+00> : vector<8x128xf32>
    %3 = tpu.matmul %1, %2, %cst {dimension_numbers = #tpu.dot_dimension_numbers<[1], [0], [0], [1], [0, 0, 1, 1], [], []>} : vector<8x100xbf16>, vector<100x128xbf16>, vector<8x128xf32> -> vector<8x128xf32>
    %c0_3 = arith.constant 0 : index
    %c0_4 = arith.constant 0 : index
    %4 = vector.load %arg3[%c0_3, %c0_4] : memref<1x128xf32, #tpu.memory_space<vmem>>, vector<1x128xf32>
    %5 = vector.broadcast %4 : vector<1x128xf32> to vector<8x128xf32>
    %6 = arith.addf %3, %5 : vector<8x128xf32>
    %cst_5 = arith.constant 5.000000e-01 : f32
    %7 = vector.broadcast %cst_5 : f32 to vector<8x128xf32>
    %8 = arith.mulf %7, %6 : vector<8x128xf32>
    %9 = math.tanh %8 : vector<8x128xf32>
    %cst_6 = arith.constant 1.000000e+00 : f32
    %10 = vector.broadcast %cst_6 : f32 to vector<8x128xf32>
    %11 = arith.addf %9, %10 : vector<8x128xf32>
    %cst_7 = arith.constant 5.000000e-01 : f32
    %12 = vector.broadcast %cst_7 : f32 to vector<8x128xf32>
    %13 = arith.mulf %12, %11 : vector<8x128xf32>
    %c0_8 = arith.constant 0 : index
    %c0_9 = arith.constant 0 : index
    %14 = vector.load %arg4[%c0_8, %c0_9] : memref<1x128xf32, #tpu.memory_space<vmem>>, vector<1x128xf32>
    %15 = vector.broadcast %14 : vector<1x128xf32> to vector<8x128xf32>
    %16 = arith.mulf %13, %15 : vector<8x128xf32>
    %cst_10 = arith.constant dense<0.000000e+00> : vector<8xf32>
    %17 = vector.multi_reduction <add>, %16, %cst_10 [1] : vector<8x128xf32> to vector<8xf32>
    %18 = vector.shape_cast %17 : vector<8xf32> to vector<8x1xf32>
    %c0_11 = arith.constant 0 : index
    %c0_12 = arith.constant 0 : index
    %19 = vector.load %arg5[%c0_11, %c0_12] : memref<8x1xf32, #tpu.memory_space<vmem>>, vector<8x1xf32>
    tpu.vector_store %arg5[%c0_11, %c0_12], %18 {strides = array<i32>} : memref<8x1xf32, #tpu.memory_space<vmem>>, vector<8x1xf32>,
    return
  }
  func.func @transform_0(%arg0: i32) -> (i32, i32) {
    %c0_i32 = arith.constant 0 : i32
    %c0_i32_0 = arith.constant 0 : i32
    return %arg0, %c0_i32 : i32, i32
  }
  func.func @transform_1(%arg0: i32) -> (i32, i32) {
    %c0_i32 = arith.constant 0 : i32
    %c0_i32_0 = arith.constant 0 : i32
    %c0_i32_1 = arith.constant 0 : i32
    return %c0_i32, %c0_i32_0 : i32, i32
  }
  func.func @transform_2(%arg0: i32) -> (i32, i32) {
    %c0_i32 = arith.constant 0 : i32
    %c0_i32_0 = arith.constant 0 : i32
    %c0_i32_1 = arith.constant 0 : i32
    return %c0_i32, %c0_i32_0 : i32, i32
  }
  func.func @transform_3(%arg0: i32) -> (i32, i32) {
    %c0_i32 = arith.constant 0 : i32
    %c0_i32_0 = arith.constant 0 : i32
    %c0_i32_1 = arith.constant 0 : i32
    return %c0_i32, %c0_i32_0 : i32, i32
  }
  func.func @transform_4(%arg0: i32) -> (i32, i32) {
    %c0_i32 = arith.constant 0 : i32
    %c0_i32_0 = arith.constant 0 : i32
    return %arg0, %c0_i32 : i32, i32
  }
}

</mosaic_0001>

<bundles_post_ra>
// kernel: ann_forward.1
= control target key start
LH: loop header
LB: loop body
LE: loop exit
PB: predicated region body
PF: predicated region fallthrough
CT: control target
= control target key end

     0   :  { %vm80_vm0 = vcmask 1041408   ;;  %vm76_vm1 = vcmask 818176   ;;  %vm108_vm2 = vcmask 7168   ;;  %s207_s1 = inlined_call_operand.vmem [shape: bf16[100,128], index: 1, kind: input, shape index: {}]   ;;  %s208_s2 = inlined_call_operand.vmem [shape: f32[1,128], index: 2, kind: input, shape index: {}]   ;;  %s209_s0 = inlined_call_operand.vmem [shape: f32[8,100], index: 0, kind: input, shape index: {}]   ;;  %s210_s3 = inlined_call_operand.vmem [shape: f32[1,128], index: 3, kind: input, shape index: {}]   ;;  %s211_s4 = inlined_call_operand.vmem [shape: f32[8,1], index: 4, kind: output, shape index: {}]  }
   0x1   :  { %v32_v0 = vld [vmem:[%s207_s1 + $0x30] sm:$0x3]  ;;  %v144_v4 = vld [vmem:[%s207_s1 + $0x28] sm:$0xff]  ;;  %v143_v5 = vld [vmem:[%s207_s1 + $0x20] sm:$0xff] }
   0x2   :  { %v62_v1 = vunpack.c.l.b16 %v32_v0  ;;  %v142_v6 = vld [vmem:[%s207_s1 + $0x18] sm:$0xff]  ;;  %v141_v7 = vld [vmem:[%s207_s1 + $0x10] sm:$0xff]  ;;  %v140_v8 = vld [vmem:[%s207_s1 + $0x8] sm:$0xff] }
   0x3   :  { %v139_v9 = vld [vmem:[%s207_s1] sm:$0xff] }
   0x4   :  { %v69_v2 = vpack.c.b16 %v62_v1, %v62_v1  ;;  %v18_v10 = vld [vmem:[%s209_s0] sm:$0xff] }
   0x5   :  { %v19_v11 = vpack.c.bf16 %v18_v10, %v18_v10  ;;  %v145_v12 = vld [vmem:[%s208_s2] ss:$0 sm:$0xff] }
   0x6   :  { %v82_v3 = vsel %vm80_vm0, %v69_v2, 0  ;;  %v146_v19 = vld [vmem:[%s210_s3] ss:$0 sm:$0xff] }
   0x7   :  { %85 = vmatpush.bf16.msra.mxu0 %v82_v3 }
   0xb   :  { %86 = vmatpush.bf16.msra.mxu0 %v144_v4 }
   0xf   :  { %87 = vmatpush.bf16.msra.mxu0 %v143_v5 }
  0x13   :  { %88 = vmatpush.bf16.msra.mxu0 %v142_v6 }
  0x17   :  { %89 = vmatpush.bf16.msra.mxu0 %v141_v7 }
  0x1b   :  { %90 = vmatpush.bf16.msra.mxu0 %v140_v8 }
  0x1f   :  { %91 = vmatpush.bf16.msra.mxu0 %v139_v9 }
  0x22   :  { %138 = vmatmul.msk.bf16.vlgmr.msra.gmra.mxu0 %vm76_vm1, %v19_v11 }
  0x9f   :  { %v93_v13 = vpop.f32.mrf.mxu0 }
  0xa0   :  { %v94_v14 = vadd.f32 %v145_v12, %v93_v13 }
  0xa2   :  { %v97_v15 = vmul.f32 0.5, %v94_v14 }
  0xa4   :  { %147 = vtanh.f32 %v97_v15 }
  0xa7   :  { %v95_v16 = vpop.f32.mrf.mxu0 }
  0xaa   :  { %v148_v17 = vpop.eup %147 }
  0xab   :  { %v99_v18 = vadd.f32 1.0, %v148_v17 }
  0xad   :  { %v100_v20 = vmul.f32 0.5, %v99_v18 }
  0xaf   :  { %v105_v21 = vmul.f32 %v146_v19, %v100_v20 }
  0xb1   :  { %106 = vadd.xlane.f32.xlu0 %v105_v21 }
 0x124   :  { %v107_v22 = vpop.xlane.xlu0 %106 }
 0x125   :  { %109 = vst.msk [vmem:[%s211_s4] sm:$0xff] %vm108_vm2, %v107_v22 }

</bundles_post_ra>
